<compile_context>
chip_gen: v5e
topology: v5e:2x2
jax: 0.10.0
libtpu: 0.0.40
codegen_flags: <defaults>
</compile_context>

<pallas_src>
import jax
import jax.numpy as jnp
from jax.experimental import pallas as pl
from jax.experimental.pallas import tpu as pltpu

IGNORE_INDEX = -100


def _round_up(x, m):
    return ((x + m - 1) // m) * m


def _pick_vocab_tile(V, cap):
    """Return (TV, mask_ragged).  Prefer full vocab, then a lane-aligned divisor of V
    (no in-kernel masking needed), else fall back to `cap` with ragged-tail masking."""
    cap = max(128, (cap // 128) * 128)
    if V <= cap:
        return V, False
    lo = min(cap, 1024)
    for tv in range(cap, lo - 1, -128):
        if V % tv == 0:
            return tv, False
    return cap, True


def _make_kernel(V, TV, mask_ragged):
    """Build the kernel closure over static vocab size V, vocab tile TV and mask flag."""

    def kernel(logits_ref, labels_ref, sum_ref, cnt_ref, m_scr, s_scr, t_scr, iota_scr):
        # grid = (row tiles [parallel], vocab tiles [arbitrary, innermost reduction]).
        j = pl.program_id(1)
        nj = pl.num_programs(1)

        # Per-row-tile init.  Keyed on j==0 (not i==0) so it is executed by every
        # TensorCore when the row axis is sharded with "parallel" semantics.
        @pl.when(j == 0)
        def _init_row_tile():
            m_scr[...] = jnp.full_like(m_scr, -jnp.inf)   # running max
            s_scr[...] = jnp.zeros_like(s_scr)            # running exp-sum
            t_scr[...] = jnp.zeros_like(t_scr)            # target logit
            # Hoisted lane iota: built once per row tile, reused for all nj vocab tiles.
            iota_scr[...] = jax.lax.broadcasted_iota(jnp.int32, (1, TV), 1)

        xin = logits_ref[...]                    # (TR, TV) native dtype (no upcast copy)
        lbl = labels_ref[...]                    # (TR, 1) int32
        local_ids = iota_scr[...]                # (1, TV) in-tile vocab ids
        off = j * TV                             # scalar tile offset

        if mask_ragged:
            # Fallback only (V has no lane-aligned divisor): mask the padded tail of the
            # last vocab tile; a logical no-op on full tiles.
            xin = jnp.where(local_ids < (V - off), xin,
                            jnp.array(-jnp.inf, dtype=xin.dtype))

        # Running max + one-hot target select in the NATIVE dtype (exact: max is order
        # preserving, and at most one element per row survives the select, so the sum
        # only adds zeros).  Cheap on bf16 VPUs (v6e/v7x).
        tile_max = jnp.max(xin, axis=-1, keepdims=True).astype(jnp.float32)
        # NOTE: a "valid" label >= V would silently contribute a target logit of 0
        # (PyTorch would raise); out-of-range labels assumed absent, as in the reference.
        hit = local_ids == (lbl - off)           # (TR, TV) broadcast compare
        t_scr[...] += jnp.sum(jnp.where(hit, xin, jnp.zeros_like(xin)),
                              axis=-1, keepdims=True).astype(jnp.float32)

        # Online (flash-style) logsumexp accumulation in fp32.
        x = xin.astype(jnp.float32)
        m_prev = m_scr[...]
        m_new = jnp.maximum(m_prev, tile_max)
        s_scr[...] = s_scr[...] * jnp.exp(m_prev - m_new) + jnp.sum(
            jnp.exp(x - m_new), axis=-1, keepdims=True)
        m_scr[...] = m_new

        @pl.when(j == nj - 1)
        def _finish_row_tile():
            valid = lbl != IGNORE_INDEX                                  # (TR, 1) bool
            nll = m_scr[...] + jnp.log(s_scr[...]) - t_scr[...]          # (TR, 1)
            nll = jnp.where(valid, nll, 0.0)   # also kills NaN/Inf from padded rows
            # Per-row-tile partial outputs (reduced in the wrapper); no grid-global state,
            # so the row axis can be split across TensorCores.
            sum_ref[...] = jnp.sum(nll, keepdims=True).reshape(1, 1, 1)
            cnt_ref[...] = jnp.sum(valid.astype(jnp.float32),
                                   keepdims=True).reshape(1, 1, 1)

    return kernel


def next_token_loss(logits, labels, *, max_row_tile=512, max_vocab_tile=None):
    """logits: [B, S, V] (any float dtype), labels: [B, S] int. Returns scalar mean CE loss."""
    B, S, V = logits.shape
    N = B * S
    itemsize = jnp.dtype(logits.dtype).itemsize

    if max_vocab_tile is None:
        # v7x-safe defaults (64 MiB VMEM/TC, counting fp32 in-kernel temporaries).
        # v5e/v6e (128 MiB VMEM) tolerate larger tiles but these stay within ~70-85% of
        # their HBM roofline already.
        max_vocab_tile = 4096 if itemsize <= 2 else 2048
    TV, mask_ragged = _pick_vocab_tile(V, max_vocab_tile)

    # Row tile: sublane-aligned for the input dtype, capped for the VMEM budget.
    sublane = {1: 32, 2: 16, 4: 8}.get(itemsize, 8)
    if N <= max_row_tile:
        TR = max(sublane, _round_up(N, sublane))
    else:
        TR = _round_up(max_row_tile, sublane)

    Npad = _round_up(N, TR)
    ni = Npad // TR
    nj = pl.cdiv(V, TV)

    logits_flat = logits.reshape(N, V)                    # native dtype, no HBM upcast copy
    labels_flat = labels.reshape(N).astype(jnp.int32)
    if Npad != N:
        # Only labels are padded; the ragged last logits row-block's padded rows hold
        # unspecified data, neutralized per-row by the final jnp.where(valid, ...).
        labels_flat = jnp.pad(labels_flat, (0, Npad - N), constant_values=IGNORE_INDEX)
    labels_flat = labels_flat.reshape(Npad, 1)

    cost = pl.CostEstimate(
        flops=6 * N * V,                 # max/sub/exp-arg/add/compare/select per element
        transcendentals=N * V,           # one exp per element
        bytes_accessed=N * V * itemsize + Npad * 4 + ni * 8,
    )

    sums, cnts = pl.pallas_call(
        _make_kernel(V, TV, mask_ragged),
        out_shape=(jax.ShapeDtypeStruct((ni, 1, 1), jnp.float32),
                   jax.ShapeDtypeStruct((ni, 1, 1), jnp.float32)),
        grid_spec=pltpu.PrefetchScalarGridSpec(
            num_scalar_prefetch=0,
            grid=(ni, nj),
            in_specs=[
                pl.BlockSpec((TR, TV), lambda i, j: (i, j)),
                # labels block index constant along j -> fetched once per row tile
                pl.BlockSpec((TR, 1), lambda i, j: (i, 0)),
            ],
            out_specs=(
                pl.BlockSpec((1, 1, 1), lambda i, j: (i, 0, 0)),
                pl.BlockSpec((1, 1, 1), lambda i, j: (i, 0, 0)),
            ),
            scratch_shapes=[
                pltpu.VMEM((TR, 1), jnp.float32),   # running max   (per row tile)
                pltpu.VMEM((TR, 1), jnp.float32),   # running exp-sum
                pltpu.VMEM((TR, 1), jnp.float32),   # target logit
                pltpu.VMEM((1, TV), jnp.int32),     # hoisted lane iota
            ],
        ),
        compiler_params=pltpu.CompilerParams(
            dimension_semantics=("parallel", "arbitrary"),   # row axis megacore-shardable
            vmem_limit_bytes=48 * 1024 * 1024,               # safe on v5e/v6e/v7x
        ),
        cost_estimate=cost,
    )(logits_flat, labels_flat)

    # If every label is IGNORE_INDEX this is 0/0 -> NaN, matching PyTorch's degenerate
    # behavior for an empty prediction set.
    return jnp.sum(sums) / jnp.sum(cnts)


def _reference_loss(logits, labels):
    """Pure-JAX reference matching nn.CrossEntropyLoss(ignore_index=-100, reduction='mean')."""
    B, S, V = logits.shape
    x = logits.reshape(-1, V).astype(jnp.float32)
    y = labels.reshape(-1)
    lse = jax.scipy.special.logsumexp(x, axis=-1)
    tgt = jnp.take_along_axis(x, jnp.clip(y, 0, V - 1)[:, None], axis=-1)[:, 0]
    valid = (y != IGNORE_INDEX).astype(jnp.float32)
    return jnp.sum((lse - tgt) * valid) / jnp.sum(valid)


if __name__ == "__main__":
    key = jax.random.PRNGKey(0)
    B, S, V = 2, 8, 32          # batch, seq, vocab (small synthetic shapes)
    k_logits, k_labels, k_mask = jax.random.split(key, 3)

    logits = jax.random.normal(k_logits, (B, S, V), dtype=jnp.float32)

    # Case 1: all labels valid (the only case the original PyTorch forward runs).
    labels = jax.random.randint(k_labels, (B, S), 0, V, dtype=jnp.int32)
    loss = jax.block_until_ready(next_token_loss(logits, labels))
    ref = _reference_loss(logits, labels)
    assert abs(float(loss) - float(ref)) < 1e-4, (float(loss), float(ref))

    # Case 2: some ignored positions (ignore_index semantics).
    drop = jax.random.bernoulli(k_mask, 0.25, (B, S))
    labels2 = jnp.where(drop, IGNORE_INDEX, labels)
    loss2 = jax.block_until_ready(next_token_loss(logits, labels2))
    ref2 = _reference_loss(logits, labels2)
    assert abs(float(loss2) - float(ref2)) < 1e-4, (float(loss2), float(ref2))

    print("KERNEL_OK")
</pallas_src>

<mosaic_0001>
module attributes {stable_mosaic.version = 11 : i64} {
  func.func @kernel(%arg0: i32, %arg1: i32, %arg2: memref<16x32xf32, #tpu.memory_space<vmem>>, %arg3: memref<16x1xi32, #tpu.memory_space<vmem>>, %arg4: memref<1x1x1xf32, #tpu.memory_space<vmem>>, %arg5: memref<1x1x1xf32, #tpu.memory_space<vmem>>, %arg6: memref<16x1xf32, #tpu.memory_space<vmem>>, %arg7: memref<16x1xf32, #tpu.memory_space<vmem>>, %arg8: memref<16x1xf32, #tpu.memory_space<vmem>>, %arg9: memref<1x32xi32, #tpu.memory_space<vmem>>) attributes {dimension_semantics = [#tpu.dimension_semantics<parallel>, #tpu.dimension_semantics<arbitrary>], iteration_bounds = array<i64: 1, 1>, scalar_prefetch = 0 : i64, scratch_operands = 4 : i64, tpu.core_type = #tpu.core_type<tc>, window_params = [{transform_indices = @transform_0, window_bounds = array<i64: 16, 32>}, {transform_indices = @transform_1, window_bounds = array<i64: 16, 1>}, {transform_indices = @transform_2, window_bounds = array<i64: 1, 1, 1>}, {transform_indices = @transform_3, window_bounds = array<i64: 1, 1, 1>}]} {
    %c0_i32 = arith.constant 0 : i32
    %0 = arith.cmpi eq, %arg1, %c0_i32 : i32
    %1 = arith.extui %0 : i1 to i32
    %c0_i32_0 = arith.constant 0 : i32
    %2 = arith.cmpi ne, %1, %c0_i32_0 : i32
    scf.if %2 {
      %cst_23 = arith.constant 0xFF800000 : f32
      %38 = vector.broadcast %cst_23 : f32 to vector<16x1xf32>
      %c0_24 = arith.constant 0 : index
      %c0_25 = arith.constant 0 : index
      %39 = vector.load %arg6[%c0_24, %c0_25] : memref<16x1xf32, #tpu.memory_space<vmem>>, vector<16x1xf32>
      tpu.vector_store %arg6[%c0_24, %c0_25], %38 {strides = array<i32>} : memref<16x1xf32, #tpu.memory_space<vmem>>, vector<16x1xf32>,
      %cst_26 = arith.constant 0.000000e+00 : f32
      %40 = vector.broadcast %cst_26 : f32 to vector<16x1xf32>
      %c0_27 = arith.constant 0 : index
      %c0_28 = arith.constant 0 : index
      %41 = vector.load %arg7[%c0_27, %c0_28] : memref<16x1xf32, #tpu.memory_space<vmem>>, vector<16x1xf32>
      tpu.vector_store %arg7[%c0_27, %c0_28], %40 {strides = array<i32>} : memref<16x1xf32, #tpu.memory_space<vmem>>, vector<16x1xf32>,
      %cst_29 = arith.constant 0.000000e+00 : f32
      %42 = vector.broadcast %cst_29 : f32 to vector<16x1xf32>
      %c0_30 = arith.constant 0 : index
      %c0_31 = arith.constant 0 : index
      %43 = vector.load %arg8[%c0_30, %c0_31] : memref<16x1xf32, #tpu.memory_space<vmem>>, vector<16x1xf32>
      tpu.vector_store %arg8[%c0_30, %c0_31], %42 {strides = array<i32>} : memref<16x1xf32, #tpu.memory_space<vmem>>, vector<16x1xf32>,
      %44 = tpu.iota {dimensions = array<i32: 1>} : vector<1x32xi32>
      %c0_32 = arith.constant 0 : index
      %c0_33 = arith.constant 0 : index
      %45 = vector.load %arg9[%c0_32, %c0_33] : memref<1x32xi32, #tpu.memory_space<vmem>>, vector<1x32xi32>
      tpu.vector_store %arg9[%c0_32, %c0_33], %44 {strides = array<i32>} : memref<1x32xi32, #tpu.memory_space<vmem>>, vector<1x32xi32>,
    } else {
    }
    %c0 = arith.constant 0 : index
    %c0_1 = arith.constant 0 : index
    %3 = vector.load %arg2[%c0, %c0_1] : memref<16x32xf32, #tpu.memory_space<vmem>>, vector<16x32xf32>
    %c0_2 = arith.constant 0 : index
    %c0_3 = arith.constant 0 : index
    %4 = vector.load %arg3[%c0_2, %c0_3] : memref<16x1xi32, #tpu.memory_space<vmem>>, vector<16x1xi32>
    %c0_4 = arith.constant 0 : index
    %c0_5 = arith.constant 0 : index
    %5 = vector.load %arg9[%c0_4, %c0_5] : memref<1x32xi32, #tpu.memory_space<vmem>>, vector<1x32xi32>
    %c32_i32 = arith.constant 32 : i32
    %6 = arith.muli %arg1, %c32_i32 : i32
    %cst = arith.constant dense<0xFF800000> : vector<16xf32>
    %7 = vector.multi_reduction <maximumf>, %3, %cst [1] : vector<16x32xf32> to vector<16xf32>
    %8 = vector.shape_cast %7 : vector<16xf32> to vector<16x1xf32>
    %9 = vector.broadcast %6 : i32 to vector<16x1xi32>
    %10 = arith.subi %4, %9 : vector<16x1xi32>
    %11 = vector.broadcast %5 : vector<1x32xi32> to vector<16x32xi32>
    %12 = vector.broadcast %10 : vector<16x1xi32> to vector<16x32xi32>
    %13 = arith.cmpi eq, %11, %12 : vector<16x32xi32>
    %c0_6 = arith.constant 0 : index
    %c0_7 = arith.constant 0 : index
    %14 = vector.load %arg8[%c0_6, %c0_7] : memref<16x1xf32, #tpu.memory_space<vmem>>, vector<16x1xf32>
    %cst_8 = arith.constant 0.000000e+00 : f32
    %15 = vector.broadcast %cst_8 : f32 to vector<16x32xf32>
    %16 = arith.select %13, %3, %15 : vector<16x32xi1>, vector<16x32xf32>
    %cst_9 = arith.constant dense<0.000000e+00> : vector<16xf32>
    %17 = vector.multi_reduction <add>, %16, %cst_9 [1] : vector<16x32xf32> to vector<16xf32>
    %18 = vector.shape_cast %17 : vector<16xf32> to vector<16x1xf32>
    %19 = arith.addf %14, %18 : vector<16x1xf32>
    %c0_10 = arith.constant 0 : index
    %c0_11 = arith.constant 0 : index
    %20 = vector.load %arg8[%c0_10, %c0_11] : memref<16x1xf32, #tpu.memory_space<vmem>>, vector<16x1xf32>
    tpu.vector_store %arg8[%c0_10, %c0_11], %19 {strides = array<i32>} : memref<16x1xf32, #tpu.memory_space<vmem>>, vector<16x1xf32>,
    %c0_12 = arith.constant 0 : index
    %c0_13 = arith.constant 0 : index
    %21 = vector.load %arg6[%c0_12, %c0_13] : memref<16x1xf32, #tpu.memory_space<vmem>>, vector<16x1xf32>
    %22 = arith.maximumf %21, %8 : vector<16x1xf32>
    %c0_14 = arith.constant 0 : index
    %c0_15 = arith.constant 0 : index
    %23 = vector.load %arg7[%c0_14, %c0_15] : memref<16x1xf32, #tpu.memory_space<vmem>>, vector<16x1xf32>
    %24 = arith.subf %21, %22 : vector<16x1xf32>
    %25 = math.exp %24 : vector<16x1xf32>
    %26 = arith.mulf %23, %25 : vector<16x1xf32>
    %27 = vector.broadcast %22 : vector<16x1xf32> to vector<16x32xf32>
    %28 = arith.subf %3, %27 : vector<16x32xf32>
    %29 = math.exp %28 : vector<16x32xf32>
    %cst_16 = arith.constant dense<0.000000e+00> : vector<16xf32>
    %30 = vector.multi_reduction <add>, %29, %cst_16 [1] : vector<16x32xf32> to vector<16xf32>
    %31 = vector.shape_cast %30 : vector<16xf32> to vector<16x1xf32>
    %32 = arith.addf %26, %31 : vector<16x1xf32>
    %c0_17 = arith.constant 0 : index
    %c0_18 = arith.constant 0 : index
    %33 = vector.load %arg7[%c0_17, %c0_18] : memref<16x1xf32, #tpu.memory_space<vmem>>, vector<16x1xf32>
    tpu.vector_store %arg7[%c0_17, %c0_18], %32 {strides = array<i32>} : memref<16x1xf32, #tpu.memory_space<vmem>>, vector<16x1xf32>,
    %c0_19 = arith.constant 0 : index
    %c0_20 = arith.constant 0 : index
    %34 = vector.load %arg6[%c0_19, %c0_20] : memref<16x1xf32, #tpu.memory_space<vmem>>, vector<16x1xf32>
    tpu.vector_store %arg6[%c0_19, %c0_20], %22 {strides = array<i32>} : memref<16x1xf32, #tpu.memory_space<vmem>>, vector<16x1xf32>,
    %c0_i32_21 = arith.constant 0 : i32
    %35 = arith.cmpi eq, %arg1, %c0_i32_21 : i32
    %36 = arith.extui %35 : i1 to i32
    %c0_i32_22 = arith.constant 0 : i32
    %37 = arith.cmpi ne, %36, %c0_i32_22 : i32
    scf.if %37 {
      %c-100_i32 = arith.constant -100 : i32
      %38 = vector.broadcast %c-100_i32 : i32 to vector<16x1xi32>
      %39 = arith.cmpi ne, %4, %38 : vector<16x1xi32>
      %c0_23 = arith.constant 0 : index
      %c0_24 = arith.constant 0 : index
      %40 = vector.load %arg6[%c0_23, %c0_24] : memref<16x1xf32, #tpu.memory_space<vmem>>, vector<16x1xf32>
      %c0_25 = arith.constant 0 : index
      %c0_26 = arith.constant 0 : index
      %41 = vector.load %arg7[%c0_25, %c0_26] : memref<16x1xf32, #tpu.memory_space<vmem>>, vector<16x1xf32>
      %42 = math.log %41 : vector<16x1xf32>
      %43 = arith.addf %40, %42 : vector<16x1xf32>
      %c0_27 = arith.constant 0 : index
      %c0_28 = arith.constant 0 : index
      %44 = vector.load %arg8[%c0_27, %c0_28] : memref<16x1xf32, #tpu.memory_space<vmem>>, vector<16x1xf32>
      %45 = arith.subf %43, %44 : vector<16x1xf32>
      %cst_29 = arith.constant 0.000000e+00 : f32
      %46 = vector.broadcast %cst_29 : f32 to vector<16x1xf32>
      %47 = arith.select %39, %45, %46 : vector<16x1xi1>, vector<16x1xf32>
      %48 = vector.shape_cast %47 : vector<16x1xf32> to vector<1x16x1xf32>
      %cst_30 = arith.constant dense<0.000000e+00> : vector<1xf32>
      %49 = vector.multi_reduction <add>, %48, %cst_30 [1, 2] : vector<1x16x1xf32> to vector<1xf32>
      %50 = vector.shape_cast %49 : vector<1xf32> to vector<1x1x1xf32>
      %51 = vector.extract %50[0, 0, 0] : f32 from vector<1x1x1xf32>
      %52 = vector.broadcast %51 : f32 to vector<1x1xf32>
      %53 = vector.shape_cast %52 : vector<1x1xf32> to vector<1x1x1xf32>
      %c0_31 = arith.constant 0 : index
      %c0_32 = arith.constant 0 : index
      %c0_33 = arith.constant 0 : index
      %54 = vector.load %arg4[%c0_31, %c0_32, %c0_33] : memref<1x1x1xf32, #tpu.memory_space<vmem>>, vector<1x1x1xf32>
      tpu.vector_store %arg4[%c0_31, %c0_32, %c0_33], %53 {strides = array<i32>} : memref<1x1x1xf32, #tpu.memory_space<vmem>>, vector<1x1x1xf32>,
      %55 = arith.extui %39 : vector<16x1xi1> to vector<16x1xi32>
      %56 = arith.sitofp %55 : vector<16x1xi32> to vector<16x1xf32>
      %57 = vector.shape_cast %56 : vector<16x1xf32> to vector<1x16x1xf32>
      %cst_34 = arith.constant dense<0.000000e+00> : vector<1xf32>
      %58 = vector.multi_reduction <add>, %57, %cst_34 [1, 2] : vector<1x16x1xf32> to vector<1xf32>
      %59 = vector.shape_cast %58 : vector<1xf32> to vector<1x1x1xf32>
      %60 = vector.extract %59[0, 0, 0] : f32 from vector<1x1x1xf32>
      %61 = vector.broadcast %60 : f32 to vector<1x1xf32>
      %62 = vector.shape_cast %61 : vector<1x1xf32> to vector<1x1x1xf32>
      %c0_35 = arith.constant 0 : index
      %c0_36 = arith.constant 0 : index
      %c0_37 = arith.constant 0 : index
      %63 = vector.load %arg5[%c0_35, %c0_36, %c0_37] : memref<1x1x1xf32, #tpu.memory_space<vmem>>, vector<1x1x1xf32>
      tpu.vector_store %arg5[%c0_35, %c0_36, %c0_37], %62 {strides = array<i32>} : memref<1x1x1xf32, #tpu.memory_space<vmem>>, vector<1x1x1xf32>,
    } else {
    }
    return
  }
  func.func @transform_0(%arg0: i32, %arg1: i32) -> (i32, i32) {
    %c0_i32 = arith.constant 0 : i32
    return %arg0, %arg1 : i32, i32
  }
  func.func @transform_1(%arg0: i32, %arg1: i32) -> (i32, i32) {
    %c0_i32 = arith.constant 0 : i32
    %c0_i32_0 = arith.constant 0 : i32
    return %arg0, %c0_i32 : i32, i32
  }
  func.func @transform_2(%arg0: i32, %arg1: i32) -> (i32, i32, i32) {
    %c0_i32 = arith.constant 0 : i32
    %c0_i32_0 = arith.constant 0 : i32
    %c0_i32_1 = arith.constant 0 : i32
    return %arg0, %c0_i32, %c0_i32_0 : i32, i32, i32
  }
  func.func @transform_3(%arg0: i32, %arg1: i32) -> (i32, i32, i32) {
    %c0_i32 = arith.constant 0 : i32
    %c0_i32_0 = arith.constant 0 : i32
    %c0_i32_1 = arith.constant 0 : i32
    return %arg0, %c0_i32, %c0_i32_0 : i32, i32, i32
  }
}

</mosaic_0001>

<bundles_post_ra>
// kernel: tpu_custom_call.1
= control target key start
LH: loop header
LB: loop body
LE: loop exit
PB: predicated region body
PF: predicated region fallthrough
CT: control target
= control target key end

     0   :  { %9 = vsyncpa [#allocation7], 0  ;;  %vm36_vm0 = vcmask 261120   ;;  %s364_s0 = inlined_call_operand.vmem [shape: f32[16,32], index: 0, kind: input, shape index: {}]   ;;  %s365_s1 = inlined_call_operand.vmem [shape: s32[16,1], index: 1, kind: input, shape index: {}]   ;;  %s366_s2 = inlined_call_operand.hbm [shape: f32[1,1,1], index: 2, kind: output, shape index: {0}]   ;;  %s367_s3 = inlined_call_operand.hbm [shape: f32[1,1,1], index: 3, kind: output, shape index: {1}]  }
   0x1   :  { %v30_v0 = vld [vmem:[%s364_s0] sm:$0xff] }
   0x2   :  { %10 = vsyncpa [#allocation9], 0  ;;  %v37_v1 = vsel %vm36_vm0, %v30_v0, -inf  ;;  %v31_v2 = vld [vmem:[%s364_s0 + $0x8] sm:$0xff]  ;;  %vm19_vm1 = vcmask 7168   ;;  %v277_v4 = vmov -inf   ;;  %v26_v17 = vlaneseq }
   0x3   :  { %38 = vmax.xlane.f32.xlu0 %v37_v1  ;;  %v40_v3 = vsel %vm36_vm0, %v31_v2, -inf  ;;  %20 = vst.msk [vmem:[#allocation2] sm:$0xff] %vm19_vm1, %v277_v4  ;;  %v278_v5 = vmov 0   ;;  %v279_v6 = vmov 0.0   ;;  %v323_v7 = vld [vmem:[%s365_s1] sm:$0xff]  ;;  %v329_v8 = vld [vmem:[%s365_s1 + $0x8] sm:$0xff] }
   0x4   :  { %21 = vst.msk [vmem:[#allocation2 + $0x8] sm:$0xff] %vm19_vm1, %v277_v4  ;;  %209 = vset.pattern.permute.xlu1 %v278_v5  ;;  %210 = vset.pattern.permute.xlu2 %v278_v5  ;;  %v27_v18 = vand.u32 127, %v26_v17  ;;  %vm28_vm2 = vcmask 253952   ;;  %vm115_vm5 = vcmp.ne.s32.totalorder %v323_v7, 4294967196  ;;  %vm116_vm6 = vcmp.ne.s32.totalorder %v329_v8, 4294967196  ;;  %s280_s1 = smov [#allocation6]  }
   0x5   :  { %211 = vset.pattern.permute.xlu0 %v278_v5  ;;  %22 = vst.msk [vmem:[#allocation3] sm:$0xff] %vm19_vm1, %v279_v6  ;;  %48 = vperm.xlu2 %210, %v323_v7   ;;  %v198_v45 = vsel %vm115_vm5, 1.0, %v279_v6  ;;  %v199_v49 = vsel %vm116_vm6, 1.0, %v279_v6  ;;  %s171_s19 = sshll.u32 %s280_s1, 4  ;;  %s173_s22 = sshll.u32 %s366_s2, 4  ;;  %vm146_vm7 = vcmask 0   ;;  %s172_s19 = int_to_ptr.vmem [resolvable:$true] %s171_s19  ;;  %s174_s22 = int_to_ptr.hbm [resolvable:$true] %s173_s22 }
   0x6   :  { %23 = vst.msk [vmem:[#allocation3 + $0x8] sm:$0xff] %vm19_vm1, %v279_v6  ;;  %v152_v50 = vsel %vm19_vm1, %v198_v45, 0.0  ;;  %v153_v51 = vsel %vm19_vm1, %v199_v49, 0.0  ;;  %s281_s24 = smov [#allocation8]   ;;  %s184_s28 = sshll.u32 %s367_s3, 4  ;;  %s185_s28 = int_to_ptr.hbm [resolvable:$true] %s184_s28 }
   0x7   :  { %24 = vst.msk [vmem:[#allocation4] sm:$0xff] %vm19_vm1, %v279_v6  ;;  %v154_v53 = vadd.f32 %v153_v51, %v152_v50  ;;  %s182_s25 = sshll.u32 %s281_s24, 4  ;;  %s183_s25 = int_to_ptr.vmem [resolvable:$true] %s182_s25 }
   0x8   :  { %25 = vst.msk [vmem:[#allocation4 + $0x8] sm:$0xff] %vm19_vm1, %v279_v6 }
   0x9   :  { %29 = vst.msk [vmem:[#allocation5] sm:$0x1] %vm28_vm2, %v27_v18 }
   0xa   :  { %v70_v9 = vld [vmem:[#allocation2] sm:$0xff] }
   0xb   :  { %41 = vmax.xlane.f32.xlu0 %v40_v3  ;;  %v71_v13 = vld [vmem:[#allocation2 + $0x8] sm:$0xff] }
   0xc   :  { %v74_v42 = vld [vmem:[#allocation3] sm:$0xff] }
   0xd   :  { %51 = vperm.xlu2 %210, %v329_v8   ;;  %v75_v48 = vld [vmem:[#allocation3 + $0x8] sm:$0xff] }
   0xe   :  { %v55_v37 = vld [vmem:[#allocation4] sm:$0xff] }
   0xf   :  { %v56_v52 = vld [vmem:[#allocation4 + $0x8] sm:$0xff] }
  0x10   :  { %v212_v19 = vld [vmem:[#allocation5] ss:$0 sm:$0xff] }
  0x5f   :  { %v49_v20 = vpop.permute.xlu2 %48 }
  0x60   :  { %vm53_vm3 = vcmp.eq.s32.totalorder %v212_v19, %v49_v20 }
  0x61   :  { %v57_v21 = vsel %vm53_vm3, %v30_v0, 0.0 }
  0x62   :  { %v59_v22 = vsel %vm36_vm0, %v57_v21, 0.0 }
  0x63   :  { %60 = vadd.xlane.f32.xlu2 %v59_v22 }
  0x67   :  { %v52_v28 = vpop.permute.xlu2 %51 }
  0x68   :  { %vm54_vm4 = vcmp.eq.s32.totalorder %v212_v19, %v52_v28 }
  0x69   :  { %v58_v32 = vsel %vm54_vm4, %v31_v2, 0.0 }
  0x6a   :  { %v62_v33 = vsel %vm36_vm0, %v58_v32, 0.0 }
  0x76   :  { %v39_v10 = vpop.xlane.xlu0 %38 }
  0x77   :  { %v72_v11 = vmax.f32 %v70_v9, %v39_v10 }
  0x79   :  { %v76_v12 = vsub.f32 %v70_v9, %v72_v11  ;;  %110 = vst.msk [vmem:[#allocation2] sm:$0xff] %vm19_vm1, %v72_v11  ;;  %86 = vperm.xlu1 %209, %v72_v11  }
  0x7b   :  { %v78_v39 = vmul.f32 1.442695, %v76_v12 }
  0x7e   :  { %v42_v14 = vpop.xlane.xlu0 %41 }
  0x7f   :  { %v73_v15 = vmax.f32 %v71_v13, %v42_v14 }
  0x80   :  { %v117_v63 = vld [vmem:[#allocation2] sm:$0xff] }
  0x81   :  { %v77_v16 = vsub.f32 %v71_v13, %v73_v15  ;;  %111 = vst.msk [vmem:[#allocation2 + $0x8] sm:$0xff] %vm19_vm1, %v73_v15  ;;  %91 = vperm.xlu1 %209, %v73_v15  }
  0x83   :  { %v80_v40 = vmul.f32 1.442695, %v77_v16 }
  0x88   :  { %v118_v5 = vld [vmem:[#allocation2 + $0x8] sm:$0xff] }
  0xd6   :  { %v61_v36 = vpop.xlane.xlu2 %60 }
  0xd7   :  { %v65_v38 = vadd.f32 %v61_v36, %v55_v37 }
  0xd9   :  { %68 = vst.msk [vmem:[#allocation4] sm:$0xff] %vm19_vm1, %v65_v38 }
  0xe0   :  { %v127_v1 = vld [vmem:[#allocation4] sm:$0xff] }
  0xeb   :  { %v87_v23 = vpop.permute.xlu1 %86 }
  0xec   :  { %v94_v24 = vsub.f32 %v30_v0, %v87_v23 }
  0xee   :  { %v96_v25 = vmul.f32 1.442695, %v94_v24 }
  0xf0   :  { %213 = vpow2.f32 %v96_v25 }
  0xf3   :  { %v92_v26 = vpop.permute.xlu1 %91 }
  0xf4   :  { %v95_v27 = vsub.f32 %v31_v2, %v92_v26 }
  0xf6   :  { %v214_v29 = vpop.eup %213  ;;  %v98_v30 = vmul.f32 1.442695, %v95_v27 }
  0xf7   :  { %v100_v31 = vsel %vm36_vm0, %v214_v29, 0.0 }
  0xf8   :  { %215 = vpow2.f32 %v98_v30  ;;  %101 = vadd.xlane.f32.xlu0 %v100_v31 }
  0xf9   :  { %217 = vpow2.f32 %v78_v39 }
  0xfa   :  { %219 = vpow2.f32 %v80_v40 }
  0xfe   :  { %v216_v34 = vpop.eup %215 }
  0xff   :  { %v103_v35 = vsel %vm36_vm0, %v216_v34, 0.0  ;;  %v218_v41 = vpop.eup %217 }
 0x100   :  { %104 = vadd.xlane.f32.xlu1 %v103_v35  ;;  %63 = vadd.xlane.f32.xlu0 %v62_v33  ;;  %v82_v43 = vmul.f32 %v218_v41, %v74_v42  ;;  %v220_v47 = vpop.eup %219 }
 0x101   :  { %v83_v54 = vmul.f32 %v220_v47, %v75_v48 }
 0x16b   :  { %v102_v44 = vpop.xlane.xlu0 %101 }
 0x16c   :  { %v106_v46 = vadd.f32 %v102_v44, %v82_v43 }
 0x16e   :  { %108 = vst.msk [vmem:[#allocation3] sm:$0xff] %vm19_vm1, %v106_v46 }
 0x173   :  { %v105_v55 = vpop.xlane.xlu1 %104  ;;  %v64_v56 = vpop.xlane.xlu0 %63 }
 0x174   :  { %v107_v57 = vadd.f32 %v105_v55, %v83_v54  ;;  %v66_v58 = vadd.f32 %v64_v56, %v56_v52 }
 0x175   :  { %v119_v59 = vld [vmem:[#allocation3] sm:$0xff] }
 0x176   :  { %109 = vst.msk [vmem:[#allocation3 + $0x8] sm:$0xff] %vm19_vm1, %v107_v57  ;;  %221 = vlog2.f32 %v119_v59 }
 0x177   :  { %69 = vst.msk [vmem:[#allocation4 + $0x8] sm:$0xff] %vm19_vm1, %v66_v58 }
 0x17c   :  { %v222_v60 = vpop.eup %221 }
 0x17d   :  { %v120_v61 = vld [vmem:[#allocation3 + $0x8] sm:$0xff]  ;;  %v122_v62 = vmul.f32 0.6931472, %v222_v60 }
 0x17e   :  { %223 = vlog2.f32 %v120_v61  ;;  %v128_v9 = vld [vmem:[#allocation4 + $0x8] sm:$0xff] }
 0x17f   :  { %v125_v0 = vadd.f32 %v122_v62, %v117_v63 }
 0x181   :  { %v129_v4 = vsub.f32 %v125_v0, %v127_v1 }
 0x183   :  { %v131_v11 = vsel %vm115_vm5, %v129_v4, 0.0 }
 0x184   :  { %v224_v2 = vpop.eup %223  ;;  %v133_v13 = vsel %vm19_vm1, %v131_v11, 0.0 }
 0x185   :  { %v124_v3 = vmul.f32 0.6931472, %v224_v2 }
 0x187   :  { %v126_v6 = vadd.f32 %v124_v3, %v118_v5 }
 0x189   :  { %v130_v10 = vsub.f32 %v126_v6, %v128_v9 }
 0x18b   :  { %v132_v12 = vsel %vm116_vm6, %v130_v10, 0.0 }
 0x18c   :  { %v134_v14 = vsel %vm19_vm1, %v132_v12, 0.0 }
 0x18d   :  { %v135_v15 = vadd.f32 %v134_v14, %v133_v13 }
 0x18f   :  { %136 = vadd.xlane.f32.xlu0 %v135_v15 }
 0x197   :  { %155 = vadd.xlane.f32.xlu0 %v154_v53 }
 0x202   :  { %v137_v16 = vpop.xlane.xlu0 %136 }
 0x203   :  { %v138_v17 = vrot.slane %v137_v16, 4 }
 0x205   :  { %v139_v18 = vadd.f32 %v138_v17, %v137_v16 }
 0x207   :  { %v140_v19 = vrot.slane %v139_v18, 2 }
 0x209   :  { %v141_v20 = vadd.f32 %v140_v19, %v139_v18 }
 0x20a   :  { %v156_v21 = vpop.xlane.xlu0 %155 }
 0x20b   :  { %v157_v22 = vrot.slane %v156_v21, 4  ;;  %v142_v23 = vrot.slane %v141_v20, 1 }
 0x20d   :  { %v158_v7 = vadd.f32 %v157_v22, %v156_v21  ;;  %v143_v24 = vadd.f32 %v142_v23, %v141_v20 }
 0x20f   :  { %v159_v25 = vrot.slane %v158_v7, 2  ;;  %200 = vpush %v143_v24 }
 0x211   :  { %v160_v8 = vadd.f32 %v159_v25, %v158_v7 }
 0x213   :  { %v161_v26 = vrot.slane %v160_v8, 1 }
 0x215   :  { %v162_v27 = vadd.f32 %v161_v26, %v160_v8 }
 0x217   :  { %202 = vpush %v162_v27 }
 0x240   :  { %s201_s23 = spop %200 }
 0x241   :  { %v145_v28 = vstv %s201_s23 }
 0x242   :  { %147 = vst.msk [vmem:[#allocation6] sm:$0x1] %vm146_vm7, %v145_v28 }
 0x243   :  { %176 = dma.vmem_to_hbm [thread:$0]  %s172_s19, 16, %s174_s22, [#allocation7]  }
 0x248   :  { %s203_s29 = spop %202 }
 0x249   :  { %v164_v29 = vstv %s203_s29 }
 0x24a   :  { %165 = vst.msk [vmem:[#allocation8] sm:$0x1] %vm146_vm7, %v164_v29 }
 0x24b   :  { %187 = dma.vmem_to_hbm [thread:$0]  %s183_s25, 16, %s185_s28, [#allocation9]  }
 0x24c   :  { %273 = dma.done.wait [#allocation7], 16  }
 0x24d   :  { %274 = vsyncadd [#allocation7], 4294967280 }
 0x24e   :  { %275 = dma.done.wait [#allocation9], 16  }
 0x24f   :  { %276 = vsyncadd [#allocation9], 4294967280 }
 0x250   :  { %196 = vsyncpa [#allocation7], 1 }
 0x251   :  { %197 = vsyncpa [#allocation9], 1 }

</bundles_post_ra>
